<compile_context>
chip_gen: v7x
topology: tpu7x:2x2x1
jax: 0.10.0
libtpu: 0.0.40
codegen_flags: <defaults>
</compile_context>

<pallas_src>
import functools

import jax
import jax.numpy as jnp
from jax.experimental import pallas as pl
from jax.experimental.pallas import tpu as pltpu

KSIZE = 7
PAD = KSIZE // 2


@functools.lru_cache(maxsize=None)
def _roll_sign():
    """+1 if pltpu.roll follows jnp.roll's shift convention, -1 otherwise.

    One tiny cached probe kernel keeps the conv tap shifts below correct
    regardless of the rotation-direction convention of the installed JAX.
    """
    def probe(x_ref, o_ref):
        o_ref[...] = pltpu.roll(x_ref[...], 1, 1)

    x = jnp.broadcast_to(jnp.arange(128, dtype=jnp.float32), (8, 128))
    y = pl.pallas_call(
        probe, out_shape=jax.ShapeDtypeStruct((8, 128), jnp.float32))(x)
    return 1 if float(y[0, 0]) > 64.0 else -1


def _spatial_attention_kernel(x_ref, w_ref, mh_ref, mw_ref, o_ref, *,
                              width, roll_sign):
    """One grid step: BN images, lane-dense on the flattened H*W axis.

    x_ref : (BN, C, HW)  VMEM, input dtype
    w_ref : (2*7*7,)     SMEM, f32 conv weight, flat OIHW order
    mh_ref: (7, HW)      VMEM, f32 row-validity masks, one per kh
    mw_ref: (7, HW)      VMEM, f32 column-validity masks, one per kw
    o_ref : (BN, C, HW)  VMEM, output
    """
    bn, num_ch, hw = x_ref.shape

    # ---- channel mean / max (one lane-dense (BN, HW) slice at a time) ----
    x0 = x_ref[:, 0, :].astype(jnp.float32)
    acc_sum = x0
    acc_max = x0
    for c in range(1, num_ch):
        xc = x_ref[:, c, :].astype(jnp.float32)
        acc_sum = acc_sum + xc
        acc_max = jnp.maximum(acc_max, xc)
    srcs = (acc_sum * (1.0 / num_ch), acc_max)      # (avg, max), each (BN, HW)

    def shift_flat(v, amount):
        # out[f] = v[(f + amount) mod HW]; the circular wrap is always
        # removed by the border masks below.
        s = (roll_sign * (-amount)) % hw
        return pltpu.roll(v, s, 1) if s else v

    # 14 row-shifted, row-masked maps: rolls land on the XLU, masks on the
    # VPU.  Together with mw below they reproduce the conv's zero padding.
    shifted = []
    for ci in range(2):
        for kh in range(KSIZE):
            dh = kh - PAD
            shifted.append(shift_flat(srcs[ci], dh * width)
                           * mh_ref[kh:kh + 1, :])

    # Per column offset: 14 scalar*vector FMAs (the conv work itself, VPU),
    # then a single lane roll + border mask.
    acc = jnp.zeros((bn, hw), jnp.float32)
    for kw in range(KSIZE):
        dw = kw - PAD
        inner = jnp.zeros((bn, hw), jnp.float32)
        for ci in range(2):
            for kh in range(KSIZE):
                wt = w_ref[ci * KSIZE * KSIZE + kh * KSIZE + kw]  # SMEM scalar
                inner = inner + wt * shifted[ci * KSIZE + kh]
        acc = acc + shift_flat(inner, dw) * mw_ref[kw:kw + 1, :]

    attn = jax.nn.sigmoid(acc)                       # (BN, HW)

    # ---- scale: lane-dense multiply + full-lane stores ----
    for c in range(num_ch):
        xc = x_ref[:, c, :].astype(jnp.float32)
        o_ref[:, c, :] = (xc * attn).astype(o_ref.dtype)


def _pick_block_n(n, c, hw, itemsize):
    """Images per grid step: amortize ~0.35us/step overhead, stay VMEM-safe."""
    io_budget = 8 * 1024 * 1024      # double-buffered in+out blocks
    conv_budget = 1 * 1024 * 1024    # ~14 live shifted maps + accumulators
    per_image_io = max(1, 4 * c * hw * itemsize)
    per_image_conv = max(1, 16 * hw * 4)
    max_bn = min(8, io_budget // per_image_io, conv_budget // per_image_conv)
    max_bn = max(1, max_bn)
    for bn in range(min(n, max_bn), 0, -1):
        if n % bn == 0:
            return bn
    return 1


def spatial_attention(x, conv_weight):
    """CBAM SpatialAttention forward.

    x: (N, C, H, W); conv_weight: (1, 2, 7, 7) (PyTorch OIHW, no bias).
    """
    N, C, H, W = x.shape
    HW = H * W
    itemsize = jnp.dtype(x.dtype).itemsize

    x_flat = x.reshape(N, C, HW)                          # lane-dense layout
    w_flat = conv_weight.astype(jnp.float32).reshape(-1)  # (98,), OIHW order

    # Border-validity masks for the "same" conv (computed once, outside the
    # kernel): mh[kh][f] == 1 iff row(f) + (kh - PAD) is a valid row,
    # mw[kw][f] == 1 iff col(f) + (kw - PAD) is a valid column.
    rows = (jnp.arange(HW, dtype=jnp.int32) // W)[None, :]
    cols = (jnp.arange(HW, dtype=jnp.int32) % W)[None, :]
    offs = jnp.arange(KSIZE, dtype=jnp.int32)[:, None] - PAD
    mh = ((rows + offs >= 0) & (rows + offs < H)).astype(jnp.float32)
    mw = ((cols + offs >= 0) & (cols + offs < W)).astype(jnp.float32)

    BN = _pick_block_n(N, C, HW, itemsize)
    grid = (N // BN,)

    kernel = functools.partial(_spatial_attention_kernel,
                               width=W, roll_sign=_roll_sign())

    # Explicit VMEM budget: double-buffered (in + out) blocks + masks +
    # headroom.  Matters on v5e (16 MiB scoped default) and v7x (64 MiB
    # physical VMEM).
    block_bytes = BN * C * HW * itemsize
    needed = 4 * block_bytes + 4 * KSIZE * HW * 4 + (4 << 20)
    vmem_limit = int(min(max(needed, 32 << 20), 64 << 20))

    # TODO(synk): for single-image calls on v7x, a second parallel grid axis
    # (e.g. H-tiles of the final scale) would keep both TensorCores busy.
    out_flat = pl.pallas_call(
        kernel,
        out_shape=jax.ShapeDtypeStruct((N, C, HW), x.dtype),
        grid=grid,
        in_specs=[
            pl.BlockSpec((BN, C, HW), lambda n: (n, 0, 0)),
            pl.BlockSpec(memory_space=pltpu.MemorySpace.SMEM),
            pl.BlockSpec((KSIZE, HW), lambda n: (0, 0)),
            pl.BlockSpec((KSIZE, HW), lambda n: (0, 0)),
        ],
        out_specs=pl.BlockSpec((BN, C, HW), lambda n: (n, 0, 0)),
        compiler_params=pltpu.CompilerParams(
            dimension_semantics=("parallel",),
            vmem_limit_bytes=vmem_limit),
    )(x_flat, w_flat, mh, mw)

    return out_flat.reshape(N, C, H, W)


def spatial_attention_ref(x, conv_weight):
    """Pure-JAX reference matching the PyTorch module."""
    avg = jnp.mean(x, axis=1, keepdims=True)
    mx = jnp.max(x, axis=1, keepdims=True)
    cat = jnp.concatenate([avg, mx], axis=1)               # (N, 2, H, W)
    out = jax.lax.conv_general_dilated(
        cat, conv_weight, window_strides=(1, 1),
        padding=((PAD, PAD), (PAD, PAD)),
        dimension_numbers=("NCHW", "OIHW", "NCHW"))
    return x * jax.nn.sigmoid(out)


if __name__ == "__main__":
    key = jax.random.PRNGKey(0)
    kx, kwt = jax.random.split(key)

    N, C, H, W = 2, 4, 16, 16
    x = jax.random.normal(kx, (N, C, H, W), dtype=jnp.float32)
    # Deterministic synthetic conv weight, PyTorch shape (out=1, in=2, 7, 7).
    conv_weight = 0.05 * jax.random.normal(kwt, (1, 2, KSIZE, KSIZE),
                                           dtype=jnp.float32)

    out = spatial_attention(x, conv_weight)
    out = jax.block_until_ready(out)

    ref = spatial_attention_ref(x, conv_weight)
    assert out.shape == x.shape
    err = float(jnp.max(jnp.abs(out - ref)))
    assert jnp.allclose(out, ref, atol=1e-5, rtol=1e-5), err

    print("KERNEL_OK")
</pallas_src>

<mosaic_0001>
module attributes {stable_mosaic.version = 11 : i64} {
  func.func @probe(%arg0: memref<8x128xf32, #tpu.memory_space<vmem>>, %arg1: memref<8x128xf32, #tpu.memory_space<vmem>>) attributes {dimension_semantics = [], scalar_prefetch = 0 : i64, scratch_operands = 0 : i64, tpu.core_type = #tpu.core_type<tc>} {
    %c0 = arith.constant 0 : index
    %c0_0 = arith.constant 0 : index
    %0 = vector.load %arg0[%c0, %c0_0] : memref<8x128xf32, #tpu.memory_space<vmem>>, vector<8x128xf32>
    %c1_i32 = arith.constant 1 : i32
    %1 = tpu.dynamic_rotate %0 by %c1_i32 dim 1 : vector<8x128xf32>, i32 -> vector<8x128xf32>
    %c0_1 = arith.constant 0 : index
    %c0_2 = arith.constant 0 : index
    %2 = vector.load %arg1[%c0_1, %c0_2] : memref<8x128xf32, #tpu.memory_space<vmem>>, vector<8x128xf32>
    tpu.vector_store %arg1[%c0_1, %c0_2], %1 {strides = array<i32>} : memref<8x128xf32, #tpu.memory_space<vmem>>, vector<8x128xf32>,
    return
  }
}

</mosaic_0001>

<bundles_post_ra>
// kernel: tpu_custom_call.1
= control target key start
LH: loop header
LB: loop body
LE: loop exit
PB: predicated region body
PF: predicated region fallthrough
CT: control target
= control target key end

     0   :  { %6 = vsyncpa [#allocation3], 0  ;;  %s128_s0 = inlined_call_operand.hbm [shape: f32[8,128], index: 0, kind: input, shape index: {}]   ;;  %s129_s1 = inlined_call_operand.hbm [shape: f32[8,128], index: 1, kind: output, shape index: {}]  }
   0x1   :  { %7 = vsyncpa [#allocation4], 0  ;;  %s91_s6 = smov [#allocation2]   ;;  %s43_s10 = scalar_lea.hbm %s128_s0, 128 }
   0x2   :  { %s14_s7 = sshll.u32 %s91_s6, 4  ;;  %p44_p0 = scmp.ne.s32.totalorder %s128_s0, %s43_s10  ;;  %s15_s7 = int_to_ptr.vmem [resolvable:$true] %s14_s7 }
   0x3   :  { %p47_p1 = scmp.lt.u32.totalorder %s43_s10, %s128_s0 }
   0x5   :  { %p49_p2 = pnand %p47_p1, %p44_p0 }
   0x7   :  { %52 = shalt.err (!%p49_p2)
}
   0x8   :  { %s53_s15 = scalar_lea.vmem %s15_s7, 128  ;;  %p58_p4 = scmp.lt.s32.totalorder %s15_s7, %s15_s7 }
   0x9   :  { %p54_p3 = scmp.ne.s32.totalorder %s15_s7, %s53_s15  ;;  %p59_p5 = scmp.lt.s32.totalorder %s53_s15, %s53_s15 }
   0xb   :  { %p60_p6 = por %p59_p5, %p58_p4 }
   0xd   :  { %p61_p7 = pnand %p60_p6, %p54_p3 }
   0xf   :  { %64 = shalt.err (!%p61_p7)
}
  0x10   :  { %17 = dma.hbm_to_vmem [thread:$0]  %s128_s0, 128, %s15_s7, [#allocation3]  }
  0x11   :  { %87 = dma.done.wait [#allocation3], 128  }
  0x12   :  { %88 = vsyncadd [#allocation3], 4294967168  ;;  %v21_v0 = vld [vmem:[#allocation2] sm:$0xff]  ;;  %s92_s18 = smov 1   ;;  %s93_s19 = smov [#allocation5]  }
  0x13   :  { %22 = vrot.lane.b32.xlu0 %v21_v0, %s92_s18  ;;  %s31_s20 = sshll.u32 %s93_s19, 4  ;;  %s32_s20 = int_to_ptr.vmem [resolvable:$true] %s31_s20 }
  0x14   :  { %s65_s21 = scalar_lea.vmem %s32_s20, 128  ;;  %p70_p9 = scmp.lt.s32.totalorder %s32_s20, %s32_s20 }
  0x15   :  { %p66_p8 = scmp.ne.s32.totalorder %s32_s20, %s65_s21  ;;  %p71_p10 = scmp.lt.s32.totalorder %s65_s21, %s65_s21 }
  0x17   :  { %p72_p11 = por %p71_p10, %p70_p9 }
  0x19   :  { %p73_p12 = pnand %p72_p11, %p66_p8 }
  0x85   :  { %v23_v1 = vpop.permute.xlu0 %22 }
  0x86   :  { %24 = vst [vmem:[#allocation5] sm:$0xff] %v23_v1 }
  0x87   :  { %76 = shalt.err (!%p73_p12)
}
  0x88   :  { %s77_s0 = scalar_lea.hbm %s129_s1, 128 }
  0x89   :  { %p78_p13 = scmp.ne.s32.totalorder %s129_s1, %s77_s0  ;;  %p81_p0 = scmp.lt.u32.totalorder %s77_s0, %s129_s1 }
  0x8b   :  { %p83_p1 = pnand %p81_p0, %p78_p13 }
  0x8d   :  { %86 = shalt.err (!%p83_p1)
}
  0x8e   :  { %34 = dma.vmem_to_hbm [thread:$0]  %s32_s20, 128, %s129_s1, [#allocation4]  }
  0x8f   :  { %89 = dma.done.wait [#allocation4], 128  }
  0x90   :  { %90 = vsyncadd [#allocation4], 4294967168 }
  0x91   :  { %38 = vsyncpa [#allocation3], 1 }
  0x92   :  { %39 = vsyncpa [#allocation4], 1 }

</bundles_post_ra>
